<compile_context>
chip_gen: v7x
topology: tpu7x:2x2x1
jax: 0.10.0
libtpu: 0.0.40
codegen_flags: <defaults>
</compile_context>

<pallas_src>
import jax
import jax.numpy as jnp
from jax.experimental import pallas as pl
from jax.experimental.pallas import tpu as pltpu

H_S = 2
EPS = 1e-5
P = 128          # unified lane width — every layer padded to 128 lanes
N_W = 11         # number of linear layers (128x128 weight tiles in the slab)
N_B = 16         # bias/BN rows in the slab (15 used + 1 pad row)

# Bias / BN row indices inside the slab (after the 11 weight tiles).
_B_E1, _B_G1, _B_BB1 = 0, 1, 2
_B_E2, _B_G2, _B_BB2 = 3, 4, 5
_B_E3, _B_E4 = 6, 7
_B_D1, _B_D2, _B_D3, _B_D4 = 8, 9, 10, 11
_B_L1, _B_L2, _B_L3 = 12, 13, 14


def _autoencoder_kernel(x_ref, slab_ref, out_ref):
    """Whole forward pass, all operands VMEM-resident, grid=().

    slab layout (rows, 128):
      rows [i*128, (i+1)*128) : weight tile i (zero-padded to 128x128), i over
          [e1, e2, e3, e4, d1, d2, d3, d4, l1, l2, l3]
      row  11*128 + j         : bias / BN row j (zero-padded to 128 lanes)
    """
    x = x_ref[...]                                     # (B, 128), zero-padded cols

    def w(i):                                          # (128, 128) weight tile
        return slab_ref[pl.ds(i * P, P), :]

    def b(j):                                          # (1, 128) bias / BN row
        return slab_ref[pl.ds(N_W * P + j, 1), :]

    def linear(h, wi, bj):
        return jnp.dot(h, w(wi), preferred_element_type=jnp.float32) + b(bj)

    def batchnorm(h, gamma, beta):
        # Training-mode BatchNorm1d folded to one scale/shift multiply-add.
        mean = jnp.mean(h, axis=0, keepdims=True)
        var = jnp.mean(h * h, axis=0, keepdims=True) - mean * mean
        scale = gamma * jax.lax.rsqrt(var + EPS)       # rsqrt -> EUP slot
        shift = beta - mean * scale
        return h * scale + shift

    relu = lambda h: jnp.maximum(h, 0.0)

    # ---- encoder ----
    e = relu(batchnorm(linear(x, 0, _B_E1), b(_B_G1), b(_B_BB1)))   # (B, 128)
    e = relu(batchnorm(linear(e, 1, _B_E2), b(_B_G2), b(_B_BB2)))   # (B, 128)
    e = relu(linear(e, 2, _B_E3))                      # cols >= 64 are exactly 0
    encoded = relu(linear(e, 3, _B_E4))                # cols >= h_s are exactly 0

    # ---- decoder ----
    d = relu(linear(encoded, 4, _B_D1))
    d = relu(linear(d, 5, _B_D2))
    d = relu(linear(d, 6, _B_D3))
    decoded = linear(d, 7, _B_D4)                      # cols >= input_size are 0

    # ---- regression head ----
    r = relu(linear(encoded, 8, _B_L1))
    r = relu(linear(r, 9, _B_L2))
    regression = linear(r, 10, _B_L3)                  # cols >= 1 are 0

    # Single lane-dense (3, B, 128) output -> one unmasked writeback.
    out_ref[0, :, :] = encoded
    out_ref[1, :, :] = decoded
    out_ref[2, :, :] = regression


def _pad_w(wt):                                        # (in, out) -> (128, 128)
    fi, fo = wt.shape
    return jnp.pad(wt, ((0, P - fi), (0, P - fo)))


def _pad_b(bt):                                        # (1, out) -> (1, 128)
    return jnp.pad(bt, ((0, 0), (0, P - bt.shape[1])))


def pack_params(params):
    """Pack all weights/biases/BN params into one (11*128 + 16, 128) f32 slab."""
    w_tiles = [_pad_w(params[n][0]) for n in
               ("e1", "e2", "e3", "e4", "d1", "d2", "d3", "d4", "l1", "l2", "l3")]
    b_rows = [
        _pad_b(params["e1"][1]), _pad_b(params["bn1"][0]), _pad_b(params["bn1"][1]),
        _pad_b(params["e2"][1]), _pad_b(params["bn2"][0]), _pad_b(params["bn2"][1]),
        _pad_b(params["e3"][1]), _pad_b(params["e4"][1]),
        _pad_b(params["d1"][1]), _pad_b(params["d2"][1]),
        _pad_b(params["d3"][1]), _pad_b(params["d4"][1]),
        _pad_b(params["l1"][1]), _pad_b(params["l2"][1]), _pad_b(params["l3"][1]),
        jnp.zeros((1, P), jnp.float32),
    ]
    return jnp.concatenate(w_tiles + b_rows, axis=0)   # (1424, 128)


def init_params(key, input_size, h_s):
    """Deterministic parameter init (fan_in-uniform, PyTorch-Linear-like).

    Weights stored as (in_features, out_features) — transposed relative to
    nn.Linear.weight — biases as (1, out_features).
    """
    dims = {
        "e1": (input_size, 128), "e2": (128, 128), "e3": (128, 64), "e4": (64, h_s),
        "d1": (h_s, 64), "d2": (64, 128), "d3": (128, 128), "d4": (128, input_size),
        "l1": (h_s, 64), "l2": (64, 128), "l3": (128, 1),
    }
    params = {}
    keys = jax.random.split(key, 2 * len(dims))
    for i, (name, (fan_in, fan_out)) in enumerate(dims.items()):
        bound = 1.0 / jnp.sqrt(jnp.float32(fan_in))
        wmat = jax.random.uniform(keys[2 * i], (fan_in, fan_out),
                                  minval=-bound, maxval=bound, dtype=jnp.float32)
        bvec = jax.random.uniform(keys[2 * i + 1], (1, fan_out),
                                  minval=-bound, maxval=bound, dtype=jnp.float32)
        params[name] = (wmat, bvec)
    # BatchNorm1d(128) x 2: gamma = 1, beta = 0
    params["bn1"] = (jnp.ones((1, 128), jnp.float32), jnp.zeros((1, 128), jnp.float32))
    params["bn2"] = (jnp.ones((1, 128), jnp.float32), jnp.zeros((1, 128), jnp.float32))
    return params


def autoencoder_forward(x, params):
    batch, input_size = x.shape
    h_s = params["e4"][0].shape[1]
    assert input_size <= P and h_s <= 64

    x_pad = jnp.pad(x, ((0, 0), (0, P - input_size)))  # (B, 128), lane-dense
    slab = pack_params(params)                         # (1424, 128)

    dims = [(input_size, 128), (128, 128), (128, 64), (64, h_s),
            (h_s, 64), (64, 128), (128, 128), (128, input_size),
            (h_s, 64), (64, 128), (128, 1)]
    flops = 2 * batch * sum(fi * fo for fi, fo in dims)
    bytes_accessed = 4 * (x_pad.size + slab.size + 3 * batch * P)

    vmem = pl.BlockSpec(memory_space=pltpu.MemorySpace.VMEM)
    out = pl.pallas_call(
        _autoencoder_kernel,
        out_shape=jax.ShapeDtypeStruct((3, batch, P), jnp.float32),
        in_specs=[vmem, vmem],
        out_specs=vmem,
        cost_estimate=pl.CostEstimate(flops=flops, transcendentals=2 * P,
                                      bytes_accessed=bytes_accessed),
    )(x_pad, slab)

    encoded = out[0, :, :h_s]
    decoded = out[1, :, :input_size]
    regression = out[2, :, :1]
    return encoded, decoded, regression


def reference_forward(x, params):
    """Pure-JAX reference (original, un-folded math) for sanity checking."""
    def lin(h, p):
        return h @ p[0] + p[1]

    def bn(h, p):
        m = jnp.mean(h, axis=0, keepdims=True)
        v = jnp.mean((h - m) ** 2, axis=0, keepdims=True)
        return (h - m) * jax.lax.rsqrt(v + EPS) * p[0] + p[1]

    relu = lambda h: jnp.maximum(h, 0.0)
    e = relu(bn(lin(x, params["e1"]), params["bn1"]))
    e = relu(bn(lin(e, params["e2"]), params["bn2"]))
    e = relu(lin(e, params["e3"]))
    encoded = relu(lin(e, params["e4"]))
    d = relu(lin(encoded, params["d1"]))
    d = relu(lin(d, params["d2"]))
    d = relu(lin(d, params["d3"]))
    decoded = lin(d, params["d4"])
    r = relu(lin(encoded, params["l1"]))
    r = relu(lin(r, params["l2"]))
    regression = lin(r, params["l3"])
    return encoded, decoded, regression


if __name__ == "__main__":
    key = jax.random.PRNGKey(0)
    k_x, k_p = jax.random.split(key)

    batch = 8
    input_size = 32

    x = jax.random.normal(k_x, (batch, input_size), dtype=jnp.float32)
    params = init_params(k_p, input_size, H_S)

    enc, dec, reg = autoencoder_forward(x, params)
    jax.block_until_ready((enc, dec, reg))

    # sanity check against pure-JAX reference
    enc_r, dec_r, reg_r = reference_forward(x, params)
    assert enc.shape == (batch, H_S)
    assert dec.shape == (batch, input_size)
    assert reg.shape == (batch, 1)
    assert jnp.allclose(enc, enc_r, atol=1e-3, rtol=1e-3)
    assert jnp.allclose(dec, dec_r, atol=1e-3, rtol=1e-3)
    assert jnp.allclose(reg, reg_r, atol=1e-3, rtol=1e-3)

    print("KERNEL_OK")
</pallas_src>

<mosaic_0001>
module attributes {stable_mosaic.version = 11 : i64} {
  func.func @_autoencoder_kernel(%arg0: memref<8x128xf32, #tpu.memory_space<vmem>>, %arg1: memref<1424x128xf32, #tpu.memory_space<vmem>>, %arg2: memref<3x8x128xf32, #tpu.memory_space<vmem>>) attributes {dimension_semantics = [], scalar_prefetch = 0 : i64, scratch_operands = 0 : i64, tpu.core_type = #tpu.core_type<tc>} {
    %c0 = arith.constant 0 : index
    %c0_0 = arith.constant 0 : index
    %0 = vector.load %arg0[%c0, %c0_0] : memref<8x128xf32, #tpu.memory_space<vmem>>, vector<8x128xf32>
    %c0_1 = arith.constant 0 : index
    %c0_2 = arith.constant 0 : index
    %1 = vector.load %arg1[%c0_1, %c0_2] : memref<1424x128xf32, #tpu.memory_space<vmem>>, vector<128x128xf32>
    %cst = arith.constant dense<0.000000e+00> : vector<8x128xf32>
    %2 = tpu.matmul %0, %1, %cst {dimension_numbers = #tpu.dot_dimension_numbers<[1], [0], [0], [1], [0, 0, 1, 1], [], []>} : vector<8x128xf32>, vector<128x128xf32>, vector<8x128xf32> -> vector<8x128xf32>
    %c1408 = arith.constant 1408 : index
    %c0_3 = arith.constant 0 : index
    %3 = vector.load %arg1[%c1408, %c0_3] : memref<1424x128xf32, #tpu.memory_space<vmem>>, vector<1x128xf32>
    %4 = vector.broadcast %3 : vector<1x128xf32> to vector<8x128xf32>
    %5 = arith.addf %2, %4 : vector<8x128xf32>
    %c1409 = arith.constant 1409 : index
    %c0_4 = arith.constant 0 : index
    %6 = vector.load %arg1[%c1409, %c0_4] : memref<1424x128xf32, #tpu.memory_space<vmem>>, vector<1x128xf32>
    %c1410 = arith.constant 1410 : index
    %c0_5 = arith.constant 0 : index
    %7 = vector.load %arg1[%c1410, %c0_5] : memref<1424x128xf32, #tpu.memory_space<vmem>>, vector<1x128xf32>
    %cst_6 = arith.constant dense<0.000000e+00> : vector<128xf32>
    %8 = vector.multi_reduction <add>, %5, %cst_6 [0] : vector<8x128xf32> to vector<128xf32>
    %9 = vector.shape_cast %8 : vector<128xf32> to vector<1x128xf32>
    %cst_7 = arith.constant 8.000000e+00 : f32
    %10 = vector.broadcast %cst_7 : f32 to vector<1x128xf32>
    %11 = arith.divf %9, %10 : vector<1x128xf32>
    %12 = arith.mulf %5, %5 : vector<8x128xf32>
    %cst_8 = arith.constant dense<0.000000e+00> : vector<128xf32>
    %13 = vector.multi_reduction <add>, %12, %cst_8 [0] : vector<8x128xf32> to vector<128xf32>
    %14 = vector.shape_cast %13 : vector<128xf32> to vector<1x128xf32>
    %cst_9 = arith.constant 8.000000e+00 : f32
    %15 = vector.broadcast %cst_9 : f32 to vector<1x128xf32>
    %16 = arith.divf %14, %15 : vector<1x128xf32>
    %17 = arith.mulf %11, %11 : vector<1x128xf32>
    %18 = arith.subf %16, %17 : vector<1x128xf32>
    %cst_10 = arith.constant 9.99999974E-6 : f32
    %19 = vector.broadcast %cst_10 : f32 to vector<1x128xf32>
    %20 = arith.addf %18, %19 : vector<1x128xf32>
    %21 = math.rsqrt %20 : vector<1x128xf32>
    %22 = arith.mulf %6, %21 : vector<1x128xf32>
    %23 = arith.mulf %11, %22 : vector<1x128xf32>
    %24 = arith.subf %7, %23 : vector<1x128xf32>
    %25 = vector.broadcast %22 : vector<1x128xf32> to vector<8x128xf32>
    %26 = arith.mulf %5, %25 : vector<8x128xf32>
    %27 = vector.broadcast %24 : vector<1x128xf32> to vector<8x128xf32>
    %28 = arith.addf %26, %27 : vector<8x128xf32>
    %cst_11 = arith.constant 0.000000e+00 : f32
    %29 = vector.broadcast %cst_11 : f32 to vector<8x128xf32>
    %30 = arith.maximumf %28, %29 : vector<8x128xf32>
    %c128 = arith.constant 128 : index
    %c0_12 = arith.constant 0 : index
    %31 = vector.load %arg1[%c128, %c0_12] : memref<1424x128xf32, #tpu.memory_space<vmem>>, vector<128x128xf32>
    %cst_13 = arith.constant dense<0.000000e+00> : vector<8x128xf32>
    %32 = tpu.matmul %30, %31, %cst_13 {dimension_numbers = #tpu.dot_dimension_numbers<[1], [0], [0], [1], [0, 0, 1, 1], [], []>} : vector<8x128xf32>, vector<128x128xf32>, vector<8x128xf32> -> vector<8x128xf32>
    %c1411 = arith.constant 1411 : index
    %c0_14 = arith.constant 0 : index
    %33 = vector.load %arg1[%c1411, %c0_14] : memref<1424x128xf32, #tpu.memory_space<vmem>>, vector<1x128xf32>
    %34 = vector.broadcast %33 : vector<1x128xf32> to vector<8x128xf32>
    %35 = arith.addf %32, %34 : vector<8x128xf32>
    %c1412 = arith.constant 1412 : index
    %c0_15 = arith.constant 0 : index
    %36 = vector.load %arg1[%c1412, %c0_15] : memref<1424x128xf32, #tpu.memory_space<vmem>>, vector<1x128xf32>
    %c1413 = arith.constant 1413 : index
    %c0_16 = arith.constant 0 : index
    %37 = vector.load %arg1[%c1413, %c0_16] : memref<1424x128xf32, #tpu.memory_space<vmem>>, vector<1x128xf32>
    %cst_17 = arith.constant dense<0.000000e+00> : vector<128xf32>
    %38 = vector.multi_reduction <add>, %35, %cst_17 [0] : vector<8x128xf32> to vector<128xf32>
    %39 = vector.shape_cast %38 : vector<128xf32> to vector<1x128xf32>
    %cst_18 = arith.constant 8.000000e+00 : f32
    %40 = vector.broadcast %cst_18 : f32 to vector<1x128xf32>
    %41 = arith.divf %39, %40 : vector<1x128xf32>
    %42 = arith.mulf %35, %35 : vector<8x128xf32>
    %cst_19 = arith.constant dense<0.000000e+00> : vector<128xf32>
    %43 = vector.multi_reduction <add>, %42, %cst_19 [0] : vector<8x128xf32> to vector<128xf32>
    %44 = vector.shape_cast %43 : vector<128xf32> to vector<1x128xf32>
    %cst_20 = arith.constant 8.000000e+00 : f32
    %45 = vector.broadcast %cst_20 : f32 to vector<1x128xf32>
    %46 = arith.divf %44, %45 : vector<1x128xf32>
    %47 = arith.mulf %41, %41 : vector<1x128xf32>
    %48 = arith.subf %46, %47 : vector<1x128xf32>
    %cst_21 = arith.constant 9.99999974E-6 : f32
    %49 = vector.broadcast %cst_21 : f32 to vector<1x128xf32>
    %50 = arith.addf %48, %49 : vector<1x128xf32>
    %51 = math.rsqrt %50 : vector<1x128xf32>
    %52 = arith.mulf %36, %51 : vector<1x128xf32>
    %53 = arith.mulf %41, %52 : vector<1x128xf32>
    %54 = arith.subf %37, %53 : vector<1x128xf32>
    %55 = vector.broadcast %52 : vector<1x128xf32> to vector<8x128xf32>
    %56 = arith.mulf %35, %55 : vector<8x128xf32>
    %57 = vector.broadcast %54 : vector<1x128xf32> to vector<8x128xf32>
    %58 = arith.addf %56, %57 : vector<8x128xf32>
    %cst_22 = arith.constant 0.000000e+00 : f32
    %59 = vector.broadcast %cst_22 : f32 to vector<8x128xf32>
    %60 = arith.maximumf %58, %59 : vector<8x128xf32>
    %c256 = arith.constant 256 : index
    %c0_23 = arith.constant 0 : index
    %61 = vector.load %arg1[%c256, %c0_23] : memref<1424x128xf32, #tpu.memory_space<vmem>>, vector<128x128xf32>
    %cst_24 = arith.constant dense<0.000000e+00> : vector<8x128xf32>
    %62 = tpu.matmul %60, %61, %cst_24 {dimension_numbers = #tpu.dot_dimension_numbers<[1], [0], [0], [1], [0, 0, 1, 1], [], []>} : vector<8x128xf32>, vector<128x128xf32>, vector<8x128xf32> -> vector<8x128xf32>
    %c1414 = arith.constant 1414 : index
    %c0_25 = arith.constant 0 : index
    %63 = vector.load %arg1[%c1414, %c0_25] : memref<1424x128xf32, #tpu.memory_space<vmem>>, vector<1x128xf32>
    %64 = vector.broadcast %63 : vector<1x128xf32> to vector<8x128xf32>
    %65 = arith.addf %62, %64 : vector<8x128xf32>
    %cst_26 = arith.constant 0.000000e+00 : f32
    %66 = vector.broadcast %cst_26 : f32 to vector<8x128xf32>
    %67 = arith.maximumf %65, %66 : vector<8x128xf32>
    %c384 = arith.constant 384 : index
    %c0_27 = arith.constant 0 : index
    %68 = vector.load %arg1[%c384, %c0_27] : memref<1424x128xf32, #tpu.memory_space<vmem>>, vector<128x128xf32>
    %cst_28 = arith.constant dense<0.000000e+00> : vector<8x128xf32>
    %69 = tpu.matmul %67, %68, %cst_28 {dimension_numbers = #tpu.dot_dimension_numbers<[1], [0], [0], [1], [0, 0, 1, 1], [], []>} : vector<8x128xf32>, vector<128x128xf32>, vector<8x128xf32> -> vector<8x128xf32>
    %c1415 = arith.constant 1415 : index
    %c0_29 = arith.constant 0 : index
    %70 = vector.load %arg1[%c1415, %c0_29] : memref<1424x128xf32, #tpu.memory_space<vmem>>, vector<1x128xf32>
    %71 = vector.broadcast %70 : vector<1x128xf32> to vector<8x128xf32>
    %72 = arith.addf %69, %71 : vector<8x128xf32>
    %cst_30 = arith.constant 0.000000e+00 : f32
    %73 = vector.broadcast %cst_30 : f32 to vector<8x128xf32>
    %74 = arith.maximumf %72, %73 : vector<8x128xf32>
    %c512 = arith.constant 512 : index
    %c0_31 = arith.constant 0 : index
    %75 = vector.load %arg1[%c512, %c0_31] : memref<1424x128xf32, #tpu.memory_space<vmem>>, vector<128x128xf32>
    %cst_32 = arith.constant dense<0.000000e+00> : vector<8x128xf32>
    %76 = tpu.matmul %74, %75, %cst_32 {dimension_numbers = #tpu.dot_dimension_numbers<[1], [0], [0], [1], [0, 0, 1, 1], [], []>} : vector<8x128xf32>, vector<128x128xf32>, vector<8x128xf32> -> vector<8x128xf32>
    %c1416 = arith.constant 1416 : index
    %c0_33 = arith.constant 0 : index
    %77 = vector.load %arg1[%c1416, %c0_33] : memref<1424x128xf32, #tpu.memory_space<vmem>>, vector<1x128xf32>
    %78 = vector.broadcast %77 : vector<1x128xf32> to vector<8x128xf32>
    %79 = arith.addf %76, %78 : vector<8x128xf32>
    %cst_34 = arith.constant 0.000000e+00 : f32
    %80 = vector.broadcast %cst_34 : f32 to vector<8x128xf32>
    %81 = arith.maximumf %79, %80 : vector<8x128xf32>
    %c640 = arith.constant 640 : index
    %c0_35 = arith.constant 0 : index
    %82 = vector.load %arg1[%c640, %c0_35] : memref<1424x128xf32, #tpu.memory_space<vmem>>, vector<128x128xf32>
    %cst_36 = arith.constant dense<0.000000e+00> : vector<8x128xf32>
    %83 = tpu.matmul %81, %82, %cst_36 {dimension_numbers = #tpu.dot_dimension_numbers<[1], [0], [0], [1], [0, 0, 1, 1], [], []>} : vector<8x128xf32>, vector<128x128xf32>, vector<8x128xf32> -> vector<8x128xf32>
    %c1417 = arith.constant 1417 : index
    %c0_37 = arith.constant 0 : index
    %84 = vector.load %arg1[%c1417, %c0_37] : memref<1424x128xf32, #tpu.memory_space<vmem>>, vector<1x128xf32>
    %85 = vector.broadcast %84 : vector<1x128xf32> to vector<8x128xf32>
    %86 = arith.addf %83, %85 : vector<8x128xf32>
    %cst_38 = arith.constant 0.000000e+00 : f32
    %87 = vector.broadcast %cst_38 : f32 to vector<8x128xf32>
    %88 = arith.maximumf %86, %87 : vector<8x128xf32>
    %c768 = arith.constant 768 : index
    %c0_39 = arith.constant 0 : index
    %89 = vector.load %arg1[%c768, %c0_39] : memref<1424x128xf32, #tpu.memory_space<vmem>>, vector<128x128xf32>
    %cst_40 = arith.constant dense<0.000000e+00> : vector<8x128xf32>
    %90 = tpu.matmul %88, %89, %cst_40 {dimension_numbers = #tpu.dot_dimension_numbers<[1], [0], [0], [1], [0, 0, 1, 1], [], []>} : vector<8x128xf32>, vector<128x128xf32>, vector<8x128xf32> -> vector<8x128xf32>
    %c1418 = arith.constant 1418 : index
    %c0_41 = arith.constant 0 : index
    %91 = vector.load %arg1[%c1418, %c0_41] : memref<1424x128xf32, #tpu.memory_space<vmem>>, vector<1x128xf32>
    %92 = vector.broadcast %91 : vector<1x128xf32> to vector<8x128xf32>
    %93 = arith.addf %90, %92 : vector<8x128xf32>
    %cst_42 = arith.constant 0.000000e+00 : f32
    %94 = vector.broadcast %cst_42 : f32 to vector<8x128xf32>
    %95 = arith.maximumf %93, %94 : vector<8x128xf32>
    %c896 = arith.constant 896 : index
    %c0_43 = arith.constant 0 : index
    %96 = vector.load %arg1[%c896, %c0_43] : memref<1424x128xf32, #tpu.memory_space<vmem>>, vector<128x128xf32>
    %cst_44 = arith.constant dense<0.000000e+00> : vector<8x128xf32>
    %97 = tpu.matmul %95, %96, %cst_44 {dimension_numbers = #tpu.dot_dimension_numbers<[1], [0], [0], [1], [0, 0, 1, 1], [], []>} : vector<8x128xf32>, vector<128x128xf32>, vector<8x128xf32> -> vector<8x128xf32>
    %c1419 = arith.constant 1419 : index
    %c0_45 = arith.constant 0 : index
    %98 = vector.load %arg1[%c1419, %c0_45] : memref<1424x128xf32, #tpu.memory_space<vmem>>, vector<1x128xf32>
    %99 = vector.broadcast %98 : vector<1x128xf32> to vector<8x128xf32>
    %100 = arith.addf %97, %99 : vector<8x128xf32>
    %c1024 = arith.constant 1024 : index
    %c0_46 = arith.constant 0 : index
    %101 = vector.load %arg1[%c1024, %c0_46] : memref<1424x128xf32, #tpu.memory_space<vmem>>, vector<128x128xf32>
    %cst_47 = arith.constant dense<0.000000e+00> : vector<8x128xf32>
    %102 = tpu.matmul %74, %101, %cst_47 {dimension_numbers = #tpu.dot_dimension_numbers<[1], [0], [0], [1], [0, 0, 1, 1], [], []>} : vector<8x128xf32>, vector<128x128xf32>, vector<8x128xf32> -> vector<8x128xf32>
    %c1420 = arith.constant 1420 : index
    %c0_48 = arith.constant 0 : index
    %103 = vector.load %arg1[%c1420, %c0_48] : memref<1424x128xf32, #tpu.memory_space<vmem>>, vector<1x128xf32>
    %104 = vector.broadcast %103 : vector<1x128xf32> to vector<8x128xf32>
    %105 = arith.addf %102, %104 : vector<8x128xf32>
    %cst_49 = arith.constant 0.000000e+00 : f32
    %106 = vector.broadcast %cst_49 : f32 to vector<8x128xf32>
    %107 = arith.maximumf %105, %106 : vector<8x128xf32>
    %c1152 = arith.constant 1152 : index
    %c0_50 = arith.constant 0 : index
    %108 = vector.load %arg1[%c1152, %c0_50] : memref<1424x128xf32, #tpu.memory_space<vmem>>, vector<128x128xf32>
    %cst_51 = arith.constant dense<0.000000e+00> : vector<8x128xf32>
    %109 = tpu.matmul %107, %108, %cst_51 {dimension_numbers = #tpu.dot_dimension_numbers<[1], [0], [0], [1], [0, 0, 1, 1], [], []>} : vector<8x128xf32>, vector<128x128xf32>, vector<8x128xf32> -> vector<8x128xf32>
    %c1421 = arith.constant 1421 : index
    %c0_52 = arith.constant 0 : index
    %110 = vector.load %arg1[%c1421, %c0_52] : memref<1424x128xf32, #tpu.memory_space<vmem>>, vector<1x128xf32>
    %111 = vector.broadcast %110 : vector<1x128xf32> to vector<8x128xf32>
    %112 = arith.addf %109, %111 : vector<8x128xf32>
    %cst_53 = arith.constant 0.000000e+00 : f32
    %113 = vector.broadcast %cst_53 : f32 to vector<8x128xf32>
    %114 = arith.maximumf %112, %113 : vector<8x128xf32>
    %c1280 = arith.constant 1280 : index
    %c0_54 = arith.constant 0 : index
    %115 = vector.load %arg1[%c1280, %c0_54] : memref<1424x128xf32, #tpu.memory_space<vmem>>, vector<128x128xf32>
    %cst_55 = arith.constant dense<0.000000e+00> : vector<8x128xf32>
    %116 = tpu.matmul %114, %115, %cst_55 {dimension_numbers = #tpu.dot_dimension_numbers<[1], [0], [0], [1], [0, 0, 1, 1], [], []>} : vector<8x128xf32>, vector<128x128xf32>, vector<8x128xf32> -> vector<8x128xf32>
    %c1422 = arith.constant 1422 : index
    %c0_56 = arith.constant 0 : index
    %117 = vector.load %arg1[%c1422, %c0_56] : memref<1424x128xf32, #tpu.memory_space<vmem>>, vector<1x128xf32>
    %118 = vector.broadcast %117 : vector<1x128xf32> to vector<8x128xf32>
    %119 = arith.addf %116, %118 : vector<8x128xf32>
    %c0_57 = arith.constant 0 : index
    %c0_58 = arith.constant 0 : index
    %c0_59 = arith.constant 0 : index
    %120 = vector.load %arg2[%c0_57, %c0_58, %c0_59] : memref<3x8x128xf32, #tpu.memory_space<vmem>>, vector<1x8x128xf32>
    %121 = vector.shape_cast %120 : vector<1x8x128xf32> to vector<8x128xf32>
    %122 = vector.shape_cast %74 : vector<8x128xf32> to vector<1x8x128xf32>
    tpu.vector_store %arg2[%c0_57, %c0_58, %c0_59], %122 {strides = array<i32>} : memref<3x8x128xf32, #tpu.memory_space<vmem>>, vector<1x8x128xf32>,
    %c1 = arith.constant 1 : index
    %c0_60 = arith.constant 0 : index
    %c0_61 = arith.constant 0 : index
    %123 = vector.load %arg2[%c1, %c0_60, %c0_61] : memref<3x8x128xf32, #tpu.memory_space<vmem>>, vector<1x8x128xf32>
    %124 = vector.shape_cast %123 : vector<1x8x128xf32> to vector<8x128xf32>
    %125 = vector.shape_cast %100 : vector<8x128xf32> to vector<1x8x128xf32>
    tpu.vector_store %arg2[%c1, %c0_60, %c0_61], %125 {strides = array<i32>} : memref<3x8x128xf32, #tpu.memory_space<vmem>>, vector<1x8x128xf32>,
    %c2 = arith.constant 2 : index
    %c0_62 = arith.constant 0 : index
    %c0_63 = arith.constant 0 : index
    %126 = vector.load %arg2[%c2, %c0_62, %c0_63] : memref<3x8x128xf32, #tpu.memory_space<vmem>>, vector<1x8x128xf32>
    %127 = vector.shape_cast %126 : vector<1x8x128xf32> to vector<8x128xf32>
    %128 = vector.shape_cast %119 : vector<8x128xf32> to vector<1x8x128xf32>
    tpu.vector_store %arg2[%c2, %c0_62, %c0_63], %128 {strides = array<i32>} : memref<3x8x128xf32, #tpu.memory_space<vmem>>, vector<1x8x128xf32>,
    return
  }
}

</mosaic_0001>

<bundles_post_ra>
// kernel: tpu_custom_call.1
= control target key start
LH: loop header
LB: loop body
LE: loop exit
PB: predicated region body
PF: predicated region fallthrough
CT: control target
= control target key end

     0   :  { %7 = vsyncpa [#allocation3], 0  ;;  %s2265_s0 = inlined_call_operand.hbm [shape: f32[8,128], index: 0, kind: input, shape index: {}]   ;;  %s2266_s1 = inlined_call_operand.hbm [shape: f32[1424,128], index: 1, kind: input, shape index: {}]   ;;  %s2267_s2 = inlined_call_operand.hbm [shape: f32[3,8,128], index: 2, kind: output, shape index: {}]  }
   0x1   :  { %8 = vsyncpa [#allocation6], 0 }
   0x2   :  { %9 = vsyncpa [#allocation4], 0  ;;  %s2072_s9 = smov [#allocation2]   ;;  %s2073_s11 = smov [#allocation5]  }
   0x3   :  { %s16_s10 = sshll.u32 %s2072_s9, 4  ;;  %s25_s12 = sshll.u32 %s2073_s11, 4  ;;  %s17_s10 = int_to_ptr.vmem [resolvable:$true] %s16_s10  ;;  %s2095_s12 = int_to_ptr.vmem [resolvable:$true] %s25_s12 }
   0x4   :  { %s2000_s15 = scalar_lea.hbm %s2265_s0, 128 }
   0x5   :  { %p2001_p0 = scmp.ne.s32.totalorder %s2265_s0, %s2000_s15  ;;  %p2004_p1 = scmp.lt.u32.totalorder %s2000_s15, %s2265_s0 }
   0x7   :  { %p2006_p2 = pnand %p2004_p1, %p2001_p0 }
   0x9   :  { %2009 = shalt.err (!%p2006_p2)
}
   0xa   :  { %s2010_s20 = scalar_lea.vmem %s17_s10, 128  ;;  %p2015_p4 = scmp.lt.s32.totalorder %s17_s10, %s17_s10 }
   0xb   :  { %p2011_p3 = scmp.ne.s32.totalorder %s17_s10, %s2010_s20  ;;  %p2016_p5 = scmp.lt.s32.totalorder %s2010_s20, %s2010_s20 }
   0xd   :  { %p2017_p6 = por %p2016_p5, %p2015_p4 }
   0xf   :  { %p2018_p7 = pnand %p2017_p6, %p2011_p3 }
  0x11   :  { %2021 = shalt.err (!%p2018_p7)
}
  0x12   :  { %19 = dma.hbm_to_vmem [thread:$0]  %s2265_s0, 128, %s17_s10, [#allocation3]  }
  0x13   :  { %s2022_s25 = scalar_lea.hbm %s2266_s1, 22784 }
  0x14   :  { %p2023_p8 = scmp.ne.s32.totalorder %s2266_s1, %s2022_s25  ;;  %p2026_p9 = scmp.lt.u32.totalorder %s2022_s25, %s2266_s1 }
  0x16   :  { %p2028_p10 = pnand %p2026_p9, %p2023_p8 }
  0x18   :  { %2031 = shalt.err (!%p2028_p10)
}
  0x19   :  { %s2032_s30 = scalar_lea.vmem %s2095_s12, 22784  ;;  %p2037_p12 = scmp.lt.s32.totalorder %s2095_s12, %s2095_s12 }
  0x1a   :  { %p2033_p11 = scmp.ne.s32.totalorder %s2095_s12, %s2032_s30  ;;  %p2038_p13 = scmp.lt.s32.totalorder %s2032_s30, %s2032_s30 }
  0x1c   :  { %p2039_p0 = por %p2038_p13, %p2037_p12 }
  0x1e   :  { %p2040_p1 = pnand %p2039_p0, %p2033_p11 }
  0x20   :  { %2043 = shalt.err (!%p2040_p1)
}
  0x21   :  { %s2074_s0 = smov 128   ;;  %s2075_s3 = smov 8  }
  0x22   :  { %31 = dma.hbm_to_vmem [thread:$0]  %s2266_s1, 22784, %s2095_s12, [#allocation6], %s2074_s0, %s2074_s0, %s2075_s3  }
  0x23   :  { %2066 = dma.done.wait [#allocation3], 128  }
  0x24   :  { %2067 = vsyncadd [#allocation3], 4294967168 }
  0x25   :  { %2068 = dma.done.wait [#allocation6], 22784  }
  0x26   :  { %2069 = vsyncadd [#allocation6], 4294944512  ;;  %v2076_v0 = vmov 0.0|0.0   ;;  %vm2077_vm0 = vmmov 0   ;;  %v2078_v1 = vmov 0.0   ;;  %v39_v2 = vld [vmem:[#allocation5] sm:$0xff] }
  0x27   :  { %1724 = vmatprep.subr.bf16.mxu0 %v2076_v0  ;;  %1371 = vmatprep.mubr.msk.f32.mxu0 %vm2077_vm0, %v2078_v1  ;;  %v40_v3 = vld [vmem:[#allocation5 + $0x8] sm:$0xff]  ;;  %v41_v4 = vld [vmem:[#allocation5 + $0x10] sm:$0xff]  ;;  %v42_v6 = vld [vmem:[#allocation5 + $0x18] sm:$0xff]  ;;  %s2079_s1 = smov [#allocation7]  }
  0x28   :  { %1748 = vmatprep.subr.bf16.mxu1 %v2076_v0  ;;  %1406 = vmatprep.mubr.msk.f32.mxu1 %vm2077_vm0, %v2078_v1  ;;  %v1725_v5 = vpack.c.bf16 %v40_v3, %v39_v2  ;;  %v1728_v7 = vpack.c.bf16 %v42_v6, %v41_v4  ;;  %v43_v8 = vld [vmem:[#allocation5 + $0x20] sm:$0xff]  ;;  %v44_v9 = vld [vmem:[#allocation5 + $0x28] sm:$0xff]  ;;  %v45_v11 = vld [vmem:[#allocation5 + $0x30] sm:$0xff]  ;;  %s1128_s6 = sshll.u32 %s2079_s1, 4  ;;  %s1129_s6 = int_to_ptr.vmem [resolvable:$true] %s1128_s6 }
  0x29   :  { %v1731_v10 = vpack.c.bf16 %v44_v9, %v43_v8  ;;  %v46_v12 = vld [vmem:[#allocation5 + $0x38] sm:$0xff]  ;;  %v47_v14 = vld [vmem:[#allocation5 + $0x40] sm:$0xff]  ;;  %v48_v15 = vld [vmem:[#allocation5 + $0x48] sm:$0xff]  ;;  %s2044_s7 = scalar_lea.vmem %s1129_s6, 384  ;;  %p2049_p3 = scmp.lt.s32.totalorder %s1129_s6, %s1129_s6 }
  0x2a   :  { %1726 = vmatpush3.bf16.msra.mxu0 %v1725_v5  ;;  %v1734_v13 = vpack.c.bf16 %v46_v12, %v45_v11  ;;  %v1737_v16 = vpack.c.bf16 %v48_v15, %v47_v14  ;;  %v49_v17 = vld [vmem:[#allocation5 + $0x50] sm:$0xff]  ;;  %v50_v18 = vld [vmem:[#allocation5 + $0x58] sm:$0xff]  ;;  %v51_v20 = vld [vmem:[#allocation5 + $0x60] sm:$0xff]  ;;  %v155_v11 = vlaneseq  ;;  %p2045_p2 = scmp.ne.s32.totalorder %s1129_s6, %s2044_s7  ;;  %p2050_p4 = scmp.lt.s32.totalorder %s2044_s7, %s2044_s7 }
  0x2b   :  { %1727 = vmatprep.subr.bf16.mxu0 %v2076_v0  ;;  %v1740_v19 = vpack.c.bf16 %v50_v18, %v49_v17  ;;  %v52_v21 = vld [vmem:[#allocation5 + $0x68] sm:$0xff]  ;;  %v53_v23 = vld [vmem:[#allocation5 + $0x70] sm:$0xff]  ;;  %v54_v24 = vld [vmem:[#allocation5 + $0x78] sm:$0xff] }
  0x2c   :  { %v1743_v22 = vpack.c.bf16 %v52_v21, %v51_v20  ;;  %v1746_v25 = vpack.c.bf16 %v54_v24, %v53_v23  ;;  %v38_v26 = vld [vmem:[#allocation2] sm:$0xff]  ;;  %v166_v27 = vld [vmem:[#allocation5 + $0x80] sm:$0xff]  ;;  %v167_v28 = vld [vmem:[#allocation5 + $0x88] sm:$0xff]  ;;  %v156_v12 = vshrl.u32 %v155_v11, 7  ;;  %p2051_p5 = por %p2050_p4, %p2049_p3 }
  0x2d   :  { %v1749_v29 = vpack.c.bf16 %v167_v28, %v166_v27  ;;  %v168_v30 = vld [vmem:[#allocation5 + $0x90] sm:$0xff]  ;;  %v169_v31 = vld [vmem:[#allocation5 + $0x98] sm:$0xff]  ;;  %v170_v33 = vld [vmem:[#allocation5 + $0xa0] sm:$0xff] }
  0x2e   :  { %1729 = vmatpush3.bf16.msra.mxu0 %v1728_v7  ;;  %v1752_v32 = vpack.c.bf16 %v169_v31, %v168_v30  ;;  %v171_v34 = vld [vmem:[#allocation5 + $0xa8] sm:$0xff]  ;;  %v172_v36 = vld [vmem:[#allocation5 + $0xb0] sm:$0xff]  ;;  %v173_v37 = vld [vmem:[#allocation5 + $0xb8] sm:$0xff]  ;;  %v2153_v14 = vsub.s32 0, %v156_v12  ;;  %p2052_p6 = pnand %p2051_p5, %p2045_p2 }
  0x2f   :  { %1730 = vmatprep.subr.bf16.mxu0 %v2076_v0  ;;  %1750 = vmatpush3.bf16.msra.mxu1 %v1749_v29  ;;  %v1755_v35 = vpack.c.bf16 %v171_v34, %v170_v33  ;;  %v1758_v38 = vpack.c.bf16 %v173_v37, %v172_v36  ;;  %v174_v39 = vld [vmem:[#allocation5 + $0xc0] sm:$0xff]  ;;  %v175_v40 = vld [vmem:[#allocation5 + $0xc8] sm:$0xff]  ;;  %v176_v42 = vld [vmem:[#allocation5 + $0xd0] sm:$0xff] }
  0x30   :  { %1751 = vmatprep.subr.bf16.mxu1 %v2076_v0  ;;  %v1761_v41 = vpack.c.bf16 %v175_v40, %v174_v39  ;;  %v177_v43 = vld [vmem:[#allocation5 + $0xd8] sm:$0xff]  ;;  %v178_v45 = vld [vmem:[#allocation5 + $0xe0] sm:$0xff]  ;;  %v179_v46 = vld [vmem:[#allocation5 + $0xe8] sm:$0xff] }
  0x31   :  { %v1764_v44 = vpack.c.bf16 %v177_v43, %v176_v42  ;;  %v1767_v47 = vpack.c.bf16 %v179_v46, %v178_v45  ;;  %v180_v48 = vld [vmem:[#allocation5 + $0xf0] sm:$0xff]  ;;  %v181_v49 = vld [vmem:[#allocation5 + $0xf8] sm:$0xff]  ;;  %v1141_v51 = vld [vmem:[#allocation5 + $0x580] ss:$0 sm:$0xff] }
  0x32   :  { %1732 = vmatpush3.bf16.msra.mxu0 %v1731_v10  ;;  %v1770_v50 = vpack.c.bf16 %v181_v49, %v180_v48  ;;  %v131_v17 = vld [vmem:[#allocation5 + $0x582] sm:$0x1]  ;;  %v294_v28 = vld [vmem:[#allocation5 + $0x110] sm:$0xff]  ;;  %v295_v29 = vld [vmem:[#allocation5 + $0x118] sm:$0xff] }
  0x33   :  { %1733 = vmatprep.subr.bf16.mxu0 %v2076_v0  ;;  %1753 = vmatpush3.bf16.msra.mxu1 %v1752_v32  ;;  %v1776_v30 = vpack.c.bf16 %v295_v29, %v294_v28  ;;  %v296_v31 = vld [vmem:[#allocation5 + $0x120] sm:$0xff]  ;;  %v297_v32 = vld [vmem:[#allocation5 + $0x128] sm:$0xff]  ;;  %v298_v34 = vld [vmem:[#allocation5 + $0x130] sm:$0xff] }
  0x34   :  { %1754 = vmatprep.subr.bf16.mxu1 %v2076_v0  ;;  %v1779_v33 = vpack.c.bf16 %v297_v32, %v296_v31  ;;  %v300_v37 = vld [vmem:[#allocation5 + $0x140] sm:$0xff]  ;;  %v302_v40 = vld [vmem:[#allocation5 + $0x150] sm:$0xff] }
  0x35   :  { %v304_v43 = vld [vmem:[#allocation5 + $0x160] sm:$0xff]  ;;  %v306_v46 = vld [vmem:[#allocation5 + $0x170] sm:$0xff] }
  0x36   :  { %1735 = vmatpush3.bf16.msra.mxu0 %v1734_v13  ;;  %v130_v13 = vld [vmem:[#allocation5 + $0x581] sm:$0x1]  ;;  %v257_v31 = vld [vmem:[#allocation5 + $0x584] sm:$0x1] }
  0x37   :  { %1736 = vmatprep.subr.bf16.mxu0 %v2076_v0  ;;  %1756 = vmatpush3.bf16.msra.mxu1 %v1755_v35  ;;  %v299_v35 = vld [vmem:[#allocation5 + $0x138] sm:$0xff]  ;;  %v384_v49 = vld [vmem:[#allocation5 + $0x180] sm:$0xff] }
  0x38   :  { %1757 = vmatprep.subr.bf16.mxu1 %v2076_v0  ;;  %v1782_v36 = vpack.c.bf16 %v299_v35, %v298_v34  ;;  %v258_v34 = vld [vmem:[#allocation5 + $0x585] sm:$0x1] }
  0x3a   :  { %1738 = vmatpush3.bf16.msra.mxu0 %v1737_v16 }
  0x3b   :  { %1739 = vmatprep.subr.bf16.mxu0 %v2076_v0  ;;  %1759 = vmatpush3.bf16.msra.mxu1 %v1758_v38  ;;  %v301_v38 = vld [vmem:[#allocation5 + $0x148] sm:$0xff] }
  0x3c   :  { %1760 = vmatprep.subr.bf16.mxu1 %v2076_v0  ;;  %v1785_v39 = vpack.c.bf16 %v301_v38, %v300_v37 }
  0x3e   :  { %1741 = vmatpush3.bf16.msra.mxu0 %v1740_v19 }
  0x3f   :  { %1742 = vmatprep.subr.bf16.mxu0 %v2076_v0  ;;  %1762 = vmatpush3.bf16.msra.mxu1 %v1761_v41  ;;  %v303_v41 = vld [vmem:[#allocation5 + $0x158] sm:$0xff] }
  0x40   :  { %1763 = vmatprep.subr.bf16.mxu1 %v2076_v0  ;;  %v1788_v42 = vpack.c.bf16 %v303_v41, %v302_v40 }
  0x42   :  { %1744 = vmatpush3.bf16.msra.mxu0 %v1743_v22 }
  0x43   :  { %1745 = vmatprep.subr.bf16.mxu0 %v2076_v0  ;;  %1765 = vmatpush3.bf16.msra.mxu1 %v1764_v44  ;;  %v305_v44 = vld [vmem:[#allocation5 + $0x168] sm:$0xff] }
  0x44   :  { %1766 = vmatprep.subr.bf16.mxu1 %v2076_v0  ;;  %v1791_v45 = vpack.c.bf16 %v305_v44, %v304_v43  ;;  %v399_v43 = vld [vmem:[#allocation5 + $0x1f8] sm:$0xff] }
  0x46   :  { %1747 = vmatpush3.bf16.msra.mxu0 %v1746_v25  ;;  %v292_v25 = vld [vmem:[#allocation5 + $0x100] sm:$0xff] }
  0x47   :  { %1772 = vmatprep.subr.bf16.mxu0 %v2076_v0  ;;  %1768 = vmatpush3.bf16.msra.mxu1 %v1767_v47  ;;  %v307_v47 = vld [vmem:[#allocation5 + $0x178] sm:$0xff] }
  0x48   :  { %1769 = vmatprep.subr.bf16.mxu1 %v2076_v0  ;;  %v1794_v48 = vpack.c.bf16 %v307_v47, %v306_v46  ;;  %v477_v46 = vld [vmem:[#allocation5 + $0x208] sm:$0xff]  ;;  %v478_v47 = vld [vmem:[#allocation5 + $0x210] sm:$0xff] }
  0x49   :  { %1372 = vmatmul.mubr.f32.vlgmr.msra.gmra.mrb[0].mxu0 %v38_v26  ;;  %v293_v26 = vld [vmem:[#allocation5 + $0x108] sm:$0xff] }
  0x4a   :  { %1441 = vmatprep.mubr.msk.f32.mxu0 %vm2077_vm0, %v2078_v1  ;;  %v1773_v27 = vpack.c.bf16 %v293_v26, %v292_v25 }
  0x4b   :  { %1771 = vmatpush3.bf16.msra.mxu1 %v1770_v50  ;;  %v385_v50 = vld [vmem:[#allocation5 + $0x188] sm:$0xff] }
  0x4c   :  { %1796 = vmatprep.subr.bf16.mxu1 %v2076_v0  ;;  %1774 = vmatpush3.bf16.msra.mxu0 %v1773_v27 }
  0x4d   :  { %1775 = vmatprep.subr.bf16.mxu0 %v2076_v0 }
  0x50   :  { %1777 = vmatpush3.bf16.msra.mxu0 %v1776_v30 }
  0x51   :  { %1778 = vmatprep.subr.bf16.mxu0 %v2076_v0 }
  0x54   :  { %1780 = vmatpush3.bf16.msra.mxu0 %v1779_v33 }
  0x55   :  { %1781 = vmatprep.subr.bf16.mxu0 %v2076_v0 }
  0x58   :  { %1783 = vmatpush3.bf16.msra.mxu0 %v1782_v36 }
  0x59   :  { %1784 = vmatprep.subr.bf16.mxu0 %v2076_v0 }
  0x5c   :  { %1786 = vmatpush3.bf16.msra.mxu0 %v1785_v39 }
  0x5d   :  { %1787 = vmatprep.subr.bf16.mxu0 %v2076_v0 }
  0x60   :  { %1789 = vmatpush3.bf16.msra.mxu0 %v1788_v42  ;;  %v398_v42 = vld [vmem:[#allocation5 + $0x1f0] sm:$0xff] }
  0x61   :  { %1790 = vmatprep.subr.bf16.mxu0 %v2076_v0  ;;  %v1818_v44 = vpack.c.bf16 %v399_v43, %v398_v42  ;;  %v661_v42 = vld [vmem:[#allocation5 + $0x308] sm:$0xff]  ;;  %v662_v43 = vld [vmem:[#allocation5 + $0x310] sm:$0xff] }
  0x64   :  { %1792 = vmatpush3.bf16.msra.mxu0 %v1791_v45  ;;  %v476_v45 = vld [vmem:[#allocation5 + $0x200] sm:$0xff] }
  0x65   :  { %1793 = vmatprep.subr.bf16.mxu0 %v2076_v0 }
  0x68   :  { %1795 = vmatpush3.bf16.msra.mxu0 %v1794_v48  ;;  %v1821_v48 = vpack.c.bf16 %v477_v46, %v476_v45  ;;  %v663_v45 = vld [vmem:[#allocation5 + $0x318] sm:$0xff] }
  0x69   :  { %1820 = vmatprep.subr.bf16.mxu0 %v2076_v0  ;;  %v1872_v46 = vpack.c.bf16 %v663_v45, %v662_v43  ;;  %v850_v45 = vld [vmem:[#allocation5 + $0x438] sm:$0xff] }
 0x11c   :  { %v126_v52 = vpop.f32.mrb[0].mxu0 }
 0x11d   :  { %v127_v53 = vadd.f32 %v1141_v51, %v126_v52  ;;  %v1373_v54 = vpop.f32.mrb[1].mxu0  ;;  %v386_v51 = vld [vmem:[#allocation5 + $0x190] sm:$0xff]  ;;  %v1797_v52 = vpack.c.bf16 %v385_v50, %v384_v49  ;;  %v479_v49 = vld [vmem:[#allocation5 + $0x218] sm:$0xff] }
 0x11e   :  { %v1824_v50 = vpack.c.bf16 %v479_v49, %v478_v47  ;;  %v664_v47 = vld [vmem:[#allocation5 + $0x320] sm:$0xff] }
 0x11f   :  { %v132_v55 = vrot.slane %v127_v53, 4  ;;  %v140_v56 = vmul.f32 %v127_v53, %v127_v53 }
 0x121   :  { %v133_v57 = vadd.f32 %v132_v55, %v127_v53  ;;  %v141_v58 = vrot.slane %v140_v56, 4  ;;  %v388_v55 = vld [vmem:[#allocation5 + $0x1a0] sm:$0xff] }
 0x123   :  { %v134_v59 = vrot.slane %v133_v57, 2  ;;  %v142_v60 = vadd.f32 %v141_v58, %v140_v56  ;;  %v389_v56 = vld [vmem:[#allocation5 + $0x1a8] sm:$0xff]  ;;  %v390_v58 = vld [vmem:[#allocation5 + $0x1b0] sm:$0xff] }
 0x125   :  { %v135_v61 = vadd.f32 %v134_v59, %v133_v57  ;;  %v143_v62 = vrot.slane %v142_v60, 2  ;;  %v1803_v57 = vpack.c.bf16 %v389_v56, %v388_v55  ;;  %v391_v59 = vld [vmem:[#allocation5 + $0x1b8] sm:$0xff]  ;;  %v484_v56 = vld [vmem:[#allocation5 + $0x240] sm:$0xff] }
 0x127   :  { %v136_v63 = vrot.slane %v135_v61, 1  ;;  %v144_v2 = vadd.f32 %v143_v62, %v142_v60  ;;  %v1806_v60 = vpack.c.bf16 %v391_v59, %v390_v58  ;;  %v393_v62 = vld [vmem:[#allocation5 + $0x1c8] sm:$0xff]  ;;  %v486_v59 = vld [vmem:[#allocation5 + $0x250] sm:$0xff] }
 0x129   :  { %v137_v3 = vadd.f32 %v136_v63, %v135_v61  ;;  %v145_v4 = vrot.slane %v144_v2, 1  ;;  %v392_v61 = vld [vmem:[#allocation5 + $0x1c0] sm:$0xff] }
 0x12a   :  { %v1809_v63 = vpack.c.bf16 %v393_v62, %v392_v61  ;;  %v488_v62 = vld [vmem:[#allocation5 + $0x260] sm:$0xff] }
 0x12b   :  { %v146_v5 = vadd.f32 %v145_v4, %v144_v2  ;;  %v139_v6 = vmul.f32 0.125, %v137_v3  ;;  %v394_v2 = vld [vmem:[#allocation5 + $0x1d0] sm:$0xff]  ;;  %v395_v3 = vld [vmem:[#allocation5 + $0x1d8] sm:$0xff] }
 0x12c   :  { %v1812_v4 = vpack.c.bf16 %v395_v3, %v394_v2  ;;  %v1143_v3 = vld [vmem:[#allocation5 + $0x586] ss:$0 sm:$0xff] }
 0x12d   :  { %v147_v7 = vmul.f32 0.125, %v146_v5  ;;  %v148_v8 = vmul.f32 %v139_v6, %v139_v6  ;;  %v396_v5 = vld [vmem:[#allocation5 + $0x1e0] sm:$0xff] }
 0x12f   :  { %v149_v9 = vsub.f32 %v147_v7, %v148_v8  ;;  %v1142_v8 = vld [vmem:[#allocation5 + $0x583] ss:$0 sm:$0xff] }
 0x131   :  { %v150_v10 = vadd.f32 1e-05, %v149_v9 }
 0x133   :  { %1996 = vrsqrt.f32 %v150_v10 }
 0x13d   :  { %v1997_v15 = vpop.eup %1996 }
 0x13e   :  { %v152_v16 = vmul.f32 %v1997_v15, %v130_v13 }
 0x140   :  { %v153_v18 = vmul.f32 %v152_v16, %v139_v6  ;;  %v158_v19 = vrot.slane %v152_v16, %v2153_v14  ;;  %v397_v6 = vld [vmem:[#allocation5 + $0x1e8] sm:$0xff] }
 0x141   :  { %v1815_v7 = vpack.c.bf16 %v397_v6, %v396_v5 }
 0x142   :  { %v154_v20 = vsub.f32 %v131_v17, %v153_v18  ;;  %v159_v21 = vmul.f32 %v158_v19, %v127_v53  ;;  %v387_v53 = vld [vmem:[#allocation5 + $0x198] sm:$0xff] }
 0x143   :  { %v1800_v54 = vpack.c.bf16 %v387_v53, %v386_v51  ;;  %v481_v51 = vld [vmem:[#allocation5 + $0x228] sm:$0xff]  ;;  %v482_v53 = vld [vmem:[#allocation5 + $0x230] sm:$0xff] }
 0x144   :  { %v163_v22 = vrot.slane %v154_v20, %v2153_v14 }
 0x146   :  { %v164_v23 = vadd.f32 %v163_v22, %v159_v21 }
 0x148   :  { %v165_v24 = vmax.f32 %v164_v23, 0.0 }
 0x14a   :  { %1407 = vmatmul.mubr.f32.vlgmr.msra.gmra.mrb[0].mxu1 %v165_v24 }
 0x14b   :  { %1476 = vmatprep.mubr.msk.f32.mxu1 %vm2077_vm0, %v2078_v1  ;;  %1798 = vmatpush3.bf16.msra.mxu1 %v1797_v52 }
 0x14c   :  { %1799 = vmatprep.subr.bf16.mxu1 %v2076_v0 }
 0x14f   :  { %1801 = vmatpush3.bf16.msra.mxu1 %v1800_v54  ;;  %v483_v54 = vld [vmem:[#allocation5 + $0x238] sm:$0xff] }
 0x150   :  { %1802 = vmatprep.subr.bf16.mxu1 %v2076_v0  ;;  %v1830_v55 = vpack.c.bf16 %v483_v54, %v482_v53  ;;  %v669_v53 = vld [vmem:[#allocation5 + $0x348] sm:$0xff] }
 0x153   :  { %1804 = vmatpush3.bf16.msra.mxu1 %v1803_v57  ;;  %v485_v57 = vld [vmem:[#allocation5 + $0x248] sm:$0xff] }
 0x154   :  { %1805 = vmatprep.subr.bf16.mxu1 %v2076_v0  ;;  %v1833_v58 = vpack.c.bf16 %v485_v57, %v484_v56  ;;  %v671_v56 = vld [vmem:[#allocation5 + $0x358] sm:$0xff] }
 0x157   :  { %1807 = vmatpush3.bf16.msra.mxu1 %v1806_v60  ;;  %v487_v60 = vld [vmem:[#allocation5 + $0x258] sm:$0xff] }
 0x158   :  { %1808 = vmatprep.subr.bf16.mxu1 %v2076_v0  ;;  %v1836_v61 = vpack.c.bf16 %v487_v60, %v486_v59  ;;  %v673_v59 = vld [vmem:[#allocation5 + $0x368] sm:$0xff] }
 0x15b   :  { %1810 = vmatpush3.bf16.msra.mxu1 %v1809_v63  ;;  %v489_v63 = vld [vmem:[#allocation5 + $0x268] sm:$0xff] }
 0x15c   :  { %1811 = vmatprep.subr.bf16.mxu1 %v2076_v0  ;;  %v1839_v2 = vpack.c.bf16 %v489_v63, %v488_v62 }
 0x15f   :  { %1813 = vmatpush3.bf16.msra.mxu1 %v1812_v4 }
 0x160   :  { %1814 = vmatprep.subr.bf16.mxu1 %v2076_v0 }
 0x163   :  { %1816 = vmatpush3.bf16.msra.mxu1 %v1815_v7 }
 0x164   :  { %1817 = vmatprep.subr.bf16.mxu1 %v2076_v0 }
 0x167   :  { %1819 = vmatpush3.bf16.msra.mxu1 %v1818_v44 }
 0x168   :  { %1844 = vmatprep.subr.bf16.mxu1 %v2076_v0 }
 0x21d   :  { %v253_v9 = vpop.f32.mrb[0].mxu1 }
 0x21e   :  { %v254_v10 = vadd.f32 %v1142_v8, %v253_v9  ;;  %v1408_v11 = vpop.f32.mrb[1].mxu1  ;;  %v490_v8 = vld [vmem:[#allocation5 + $0x270] sm:$0xff]  ;;  %v491_v9 = vld [vmem:[#allocation5 + $0x278] sm:$0xff] }
 0x21f   :  { %v568_v11 = vld [vmem:[#allocation5 + $0x280] sm:$0xff] }
 0x220   :  { %v259_v12 = vrot.slane %v254_v10, 4  ;;  %v266_v13 = vmul.f32 %v254_v10, %v254_v10 }
 0x222   :  { %v260_v15 = vadd.f32 %v259_v12, %v254_v10  ;;  %v267_v16 = vrot.slane %v266_v13, 4  ;;  %v569_v12 = vld [vmem:[#allocation5 + $0x288] sm:$0xff] }
 0x224   :  { %v261_v17 = vrot.slane %v260_v15, 2  ;;  %v268_v18 = vadd.f32 %v267_v16, %v266_v13  ;;  %v570_v13 = vld [vmem:[#allocation5 + $0x290] sm:$0xff]  ;;  %v571_v16 = vld [vmem:[#allocation5 + $0x298] sm:$0xff] }
 0x226   :  { %v262_v19 = vadd.f32 %v261_v17, %v260_v15  ;;  %v269_v20 = vrot.slane %v268_v18, 2  ;;  %v1845_v15 = vpack.c.bf16 %v569_v12, %v568_v11  ;;  %v1848_v17 = vpack.c.bf16 %v571_v16, %v570_v13  ;;  %v755_v11 = vld [vmem:[#allocation5 + $0x398] sm:$0xff]  ;;  %v756_v13 = vld [vmem:[#allocation5 + $0x3a0] sm:$0xff] }
 0x228   :  { %v263_v21 = vrot.slane %v262_v19, 1  ;;  %v270_v22 = vadd.f32 %v269_v20, %v268_v18  ;;  %v572_v18 = vld [vmem:[#allocation5 + $0x2a0] sm:$0xff] }
 0x22a   :  { %v264_v23 = vadd.f32 %v263_v21, %v262_v19  ;;  %v271_v24 = vrot.slane %v270_v22, 1  ;;  %v573_v19 = vld [vmem:[#allocation5 + $0x2a8] sm:$0xff]  ;;  %v574_v21 = vld [vmem:[#allocation5 + $0x2b0] sm:$0xff] }
 0x22b   :  { %v1851_v20 = vpack.c.bf16 %v573_v19, %v572_v18  ;;  %v759_v18 = vld [vmem:[#allocation5 + $0x3b8] sm:$0xff] }
 0x22c   :  { %v265_v25 = vmul.f32 0.125, %v264_v23  ;;  %v272_v26 = vadd.f32 %v271_v24, %v270_v22  ;;  %v575_v22 = vld [vmem:[#allocation5 + $0x2b8] sm:$0xff]  ;;  %v576_v24 = vld [vmem:[#allocation5 + $0x2c0] sm:$0xff] }
 0x22d   :  { %v1854_v23 = vpack.c.bf16 %v575_v22, %v574_v21  ;;  %v761_v21 = vld [vmem:[#allocation5 + $0x3c8] sm:$0xff] }
 0x22e   :  { %v273_v27 = vmul.f32 0.125, %v272_v26  ;;  %v274_v28 = vmul.f32 %v265_v25, %v265_v25 }
 0x230   :  { %v275_v29 = vsub.f32 %v273_v27, %v274_v28  ;;  %v578_v27 = vld [vmem:[#allocation5 + $0x2d0] sm:$0xff]  ;;  %v579_v28 = vld [vmem:[#allocation5 + $0x2d8] sm:$0xff] }
 0x232   :  { %v276_v30 = vadd.f32 1e-05, %v275_v29  ;;  %v1860_v29 = vpack.c.bf16 %v579_v28, %v578_v27  ;;  %v765_v27 = vld [vmem:[#allocation5 + $0x3e8] sm:$0xff] }
 0x234   :  { %1998 = vrsqrt.f32 %v276_v30  ;;  %v580_v30 = vld [vmem:[#allocation5 + $0x2e0] sm:$0xff] }
 0x23e   :  { %v1999_v32 = vpop.eup %1998 }
 0x23f   :  { %v278_v33 = vmul.f32 %v1999_v32, %v257_v31  ;;  %v581_v31 = vld [vmem:[#allocation5 + $0x2e8] sm:$0xff] }
 0x240   :  { %v1863_v32 = vpack.c.bf16 %v581_v31, %v580_v30  ;;  %v843_v30 = vld [vmem:[#allocation5 + $0x400] sm:$0xff]  ;;  %v844_v31 = vld [vmem:[#allocation5 + $0x408] sm:$0xff] }
 0x241   :  { %v284_v35 = vrot.slane %v278_v33, %v2153_v14  ;;  %v279_v36 = vmul.f32 %v278_v33, %v265_v25  ;;  %v577_v25 = vld [vmem:[#allocation5 + $0x2c8] sm:$0xff]  ;;  %v1144_v33 = vld [vmem:[#allocation5 + $0x587] ss:$0 sm:$0xff] }
 0x242   :  { %v1857_v26 = vpack.c.bf16 %v577_v25, %v576_v24  ;;  %v763_v24 = vld [vmem:[#allocation5 + $0x3d8] sm:$0xff] }
 0x243   :  { %v280_v37 = vsub.f32 %v258_v34, %v279_v36  ;;  %v285_v38 = vmul.f32 %v284_v35, %v254_v10  ;;  %v1842_v10 = vpack.c.bf16 %v491_v9, %v490_v8  ;;  %v753_v8 = vld [vmem:[#allocation5 + $0x388] sm:$0xff]  ;;  %v754_v9 = vld [vmem:[#allocation5 + $0x390] sm:$0xff] }
 0x244   :  { %v1896_v12 = vpack.c.bf16 %v755_v11, %v754_v9  ;;  %v939_v9 = vld [vmem:[#allocation5 + $0x4a0] sm:$0xff] }
 0x245   :  { %v289_v39 = vrot.slane %v280_v37, %v2153_v14  ;;  %v480_v14 = vld [vmem:[#allocation5 + $0x220] sm:$0xff] }
 0x246   :  { %v1827_v52 = vpack.c.bf16 %v481_v51, %v480_v14  ;;  %v667_v14 = vld [vmem:[#allocation5 + $0x338] sm:$0xff] }
 0x247   :  { %v290_v40 = vadd.f32 %v289_v39, %v285_v38  ;;  %v582_v38 = vld [vmem:[#allocation5 + $0x2f0] sm:$0xff]  ;;  %v583_v39 = vld [vmem:[#allocation5 + $0x2f8] sm:$0xff] }
 0x249   :  { %v291_v41 = vmax.f32 %v290_v40, 0.0  ;;  %v1866_v40 = vpack.c.bf16 %v583_v39, %v582_v38  ;;  %v845_v38 = vld [vmem:[#allocation5 + $0x410] sm:$0xff]  ;;  %v846_v39 = vld [vmem:[#allocation5 + $0x418] sm:$0xff] }
 0x24b   :  { %1442 = vmatmul.mubr.f32.vlgmr.msra.gmra.mrb[2].mxu0 %v291_v41  ;;  %v660_v41 = vld [vmem:[#allocation5 + $0x300] sm:$0xff] }
 0x24c   :  { %1511 = vmatprep.mubr.msk.f32.mxu0 %vm2077_vm0, %v2078_v1  ;;  %1822 = vmatpush3.bf16.msra.mxu0 %v1821_v48  ;;  %v1869_v44 = vpack.c.bf16 %v661_v42, %v660_v41  ;;  %v665_v48 = vld [vmem:[#allocation5 + $0x328] sm:$0xff]  ;;  %v847_v41 = vld [vmem:[#allocation5 + $0x420] sm:$0xff] }
 0x24d   :  { %1823 = vmatprep.subr.bf16.mxu0 %v2076_v0  ;;  %v1875_v49 = vpack.c.bf16 %v665_v48, %v664_v47  ;;  %v848_v42 = vld [vmem:[#allocation5 + $0x428] sm:$0xff]  ;;  %v851_v47 = vld [vmem:[#allocation5 + $0x440] sm:$0xff] }
 0x24e   :  { %v1923_v43 = vpack.c.bf16 %v848_v42, %v847_v41  ;;  %v852_v48 = vld [vmem:[#allocation5 + $0x448] sm:$0xff]  ;;  %v1033_v42 = vld [vmem:[#allocation5 + $0x530] sm:$0xff] }
 0x250   :  { %1825 = vmatpush3.bf16.msra.mxu0 %v1824_v50  ;;  %v666_v50 = vld [vmem:[#allocation5 + $0x330] sm:$0xff] }
 0x251   :  { %1826 = vmatprep.subr.bf16.mxu0 %v2076_v0  ;;  %v1878_v51 = vpack.c.bf16 %v667_v14, %v666_v50  ;;  %v853_v50 = vld [vmem:[#allocation5 + $0x450] sm:$0xff]  ;;  %v854_v14 = vld [vmem:[#allocation5 + $0x458] sm:$0xff] }
 0x254   :  { %1828 = vmatpush3.bf16.msra.mxu0 %v1827_v52  ;;  %v668_v52 = vld [vmem:[#allocation5 + $0x340] sm:$0xff] }
 0x255   :  { %1829 = vmatprep.subr.bf16.mxu0 %v2076_v0  ;;  %v1881_v54 = vpack.c.bf16 %v669_v53, %v668_v52  ;;  %v855_v52 = vld [vmem:[#allocation5 + $0x460] sm:$0xff]  ;;  %v856_v53 = vld [vmem:[#allocation5 + $0x468] sm:$0xff] }
 0x258   :  { %1831 = vmatpush3.bf16.msra.mxu0 %v1830_v55  ;;  %v670_v55 = vld [vmem:[#allocation5 + $0x350] sm:$0xff] }
 0x259   :  { %1832 = vmatprep.subr.bf16.mxu0 %v2076_v0  ;;  %v1884_v57 = vpack.c.bf16 %v671_v56, %v670_v55  ;;  %v857_v55 = vld [vmem:[#allocation5 + $0x470] sm:$0xff]  ;;  %v858_v56 = vld [vmem:[#allocation5 + $0x478] sm:$0xff] }
 0x25c   :  { %1834 = vmatpush3.bf16.msra.mxu0 %v1833_v58  ;;  %v672_v58 = vld [vmem:[#allocation5 + $0x360] sm:$0xff] }
 0x25d   :  { %1835 = vmatprep.subr.bf16.mxu0 %v2076_v0  ;;  %v1887_v60 = vpack.c.bf16 %v673_v59, %v672_v58  ;;  %v766_v58 = vld [vmem:[#allocation5 + $0x3f0] sm:$0xff]  ;;  %v767_v59 = vld [vmem:[#allocation5 + $0x3f8] sm:$0xff] }
 0x260   :  { %1837 = vmatpush3.bf16.msra.mxu0 %v1836_v61  ;;  %v1145_v61 = vld [vmem:[#allocation5 + $0x588] ss:$0 sm:$0xff] }
 0x261   :  { %1838 = vmatprep.subr.bf16.mxu0 %v2076_v0 }
 0x264   :  { %1840 = vmatpush3.bf16.msra.mxu0 %v1839_v2 }
 0x265   :  { %1841 = vmatprep.subr.bf16.mxu0 %v2076_v0 }
 0x268   :  { %1843 = vmatpush3.bf16.msra.mxu0 %v1842_v10 }
 0x269   :  { %1868 = vmatprep.subr.bf16.mxu0 %v2076_v0 }
 0x31e   :  { %v379_v4 = vpop.f32.mrb[2].mxu0 }
 0x31f   :  { %v380_v5 = vadd.f32 %v1143_v3, %v379_v4  ;;  %v1443_v6 = vpop.f32.mrb[3].mxu0  ;;  %v674_v4 = vld [vmem:[#allocation5 + $0x370] sm:$0xff] }
 0x321   :  { %v383_v7 = vmax.f32 %v380_v5, 0.0  ;;  %v675_v5 = vld [vmem:[#allocation5 + $0x378] sm:$0xff] }
 0x322   :  { %v1890_v6 = vpack.c.bf16 %v675_v5, %v674_v4 }
 0x323   :  { %1477 = vmatmul.mubr.f32.vlgmr.msra.gmra.mrb[2].mxu1 %v383_v7  ;;  %v752_v7 = vld [vmem:[#allocation5 + $0x380] sm:$0xff] }
 0x324   :  { %1546 = vmatprep.mubr.msk.f32.mxu1 %vm2077_vm0, %v2078_v1  ;;  %1846 = vmatpush3.bf16.msra.mxu1 %v1845_v15  ;;  %v1893_v10 = vpack.c.bf16 %v753_v8, %v752_v7  ;;  %v757_v15 = vld [vmem:[#allocation5 + $0x3a8] sm:$0xff]  ;;  %v937_v7 = vld [vmem:[#allocation5 + $0x490] sm:$0xff]  ;;  %v938_v8 = vld [vmem:[#allocation5 + $0x498] sm:$0xff] }
 0x325   :  { %1847 = vmatprep.subr.bf16.mxu1 %v2076_v0  ;;  %v1899_v16 = vpack.c.bf16 %v757_v15, %v756_v13  ;;  %v942_v13 = vld [vmem:[#allocation5 + $0x4b8] sm:$0xff] }
 0x328   :  { %1849 = vmatpush3.bf16.msra.mxu1 %v1848_v17  ;;  %v758_v17 = vld [vmem:[#allocation5 + $0x3b0] sm:$0xff] }
 0x329   :  { %1850 = vmatprep.subr.bf16.mxu1 %v2076_v0  ;;  %v1902_v19 = vpack.c.bf16 %v759_v18, %v758_v17  ;;  %v944_v17 = vld [vmem:[#allocation5 + $0x4c8] sm:$0xff] }
 0x32c   :  { %1852 = vmatpush3.bf16.msra.mxu1 %v1851_v20  ;;  %v760_v20 = vld [vmem:[#allocation5 + $0x3c0] sm:$0xff] }
 0x32d   :  { %1853 = vmatprep.subr.bf16.mxu1 %v2076_v0  ;;  %v1905_v22 = vpack.c.bf16 %v761_v21, %v760_v20  ;;  %v947_v21 = vld [vmem:[#allocation5 + $0x4e0] sm:$0xff] }
 0x330   :  { %1855 = vmatpush3.bf16.msra.mxu1 %v1854_v23  ;;  %v762_v23 = vld [vmem:[#allocation5 + $0x3d0] sm:$0xff] }
 0x331   :  { %1856 = vmatprep.subr.bf16.mxu1 %v2076_v0  ;;  %v1908_v25 = vpack.c.bf16 %v763_v24, %v762_v23  ;;  %v949_v24 = vld [vmem:[#allocation5 + $0x4f0] sm:$0xff] }
 0x334   :  { %1858 = vmatpush3.bf16.msra.mxu1 %v1857_v26  ;;  %v764_v26 = vld [vmem:[#allocation5 + $0x3e0] sm:$0xff] }
 0x335   :  { %1859 = vmatprep.subr.bf16.mxu1 %v2076_v0  ;;  %v1911_v28 = vpack.c.bf16 %v765_v27, %v764_v26  ;;  %v1149_v26 = vld [vmem:[#allocation5 + $0x58c] ss:$0 sm:$0xff] }
 0x338   :  { %1861 = vmatpush3.bf16.msra.mxu1 %v1860_v29  ;;  %v1146_v29 = vld [vmem:[#allocation5 + $0x589] ss:$0 sm:$0xff] }
 0x339   :  { %1862 = vmatprep.subr.bf16.mxu1 %v2076_v0 }
 0x33c   :  { %1864 = vmatpush3.bf16.msra.mxu1 %v1863_v32 }
 0x33d   :  { %1865 = vmatprep.subr.bf16.mxu1 %v2076_v0 }
 0x340   :  { %1867 = vmatpush3.bf16.msra.mxu1 %v1866_v40  ;;  %v1920_v40 = vpack.c.bf16 %v846_v39, %v845_v38  ;;  %v1031_v39 = vld [vmem:[#allocation5 + $0x520] sm:$0xff] }
 0x341   :  { %1892 = vmatprep.subr.bf16.mxu1 %v2076_v0 }
 0x3f6   :  { %v471_v34 = vpop.f32.mrb[2].mxu1 }
 0x3f7   :  { %v472_v35 = vadd.f32 %v1144_v33, %v471_v34  ;;  %v1478_v36 = vpop.f32.mrb[3].mxu1 }
 0x3f9   :  { %v2196_v37 = vmax.f32 %v472_v35, 0.0  ;;  %v1917_v35 = vpack.c.bf16 %v844_v31, %v843_v30 }
 0x3fb   :  { %1118 = vst [vmem:[#allocation7] sm:$0xff] %v2196_v37  ;;  %1512 = vmatmul.mubr.f32.vlgmr.msra.gmra.mrb[4].mxu0 %v2196_v37 }
 0x3fc   :  { %1581 = vmatprep.mubr.msk.f32.mxu0 %vm2077_vm0, %v2078_v1  ;;  %1870 = vmatpush3.bf16.msra.mxu0 %v1869_v44  ;;  %v849_v44 = vld [vmem:[#allocation5 + $0x430] sm:$0xff] }
 0x3fd   :  { %1871 = vmatprep.subr.bf16.mxu0 %v2076_v0 }
 0x400   :  { %1873 = vmatpush3.bf16.msra.mxu0 %v1872_v46  ;;  %v1926_v46 = vpack.c.bf16 %v850_v45, %v849_v44  ;;  %v1035_v45 = vld [vmem:[#allocation5 + $0x540] sm:$0xff] }
 0x401   :  { %1874 = vmatprep.subr.bf16.mxu0 %v2076_v0 }
 0x404   :  { %1876 = vmatpush3.bf16.msra.mxu0 %v1875_v49  ;;  %v1929_v49 = vpack.c.bf16 %v852_v48, %v851_v47  ;;  %v1037_v48 = vld [vmem:[#allocation5 + $0x550] sm:$0xff] }
 0x405   :  { %1877 = vmatprep.subr.bf16.mxu0 %v2076_v0 }
 0x408   :  { %1879 = vmatpush3.bf16.msra.mxu0 %v1878_v51  ;;  %v1932_v51 = vpack.c.bf16 %v854_v14, %v853_v50  ;;  %v1039_v14 = vld [vmem:[#allocation5 + $0x560] sm:$0xff] }
 0x409   :  { %1880 = vmatprep.subr.bf16.mxu0 %v2076_v0 }
 0x40c   :  { %1882 = vmatpush3.bf16.msra.mxu0 %v1881_v54  ;;  %v1935_v54 = vpack.c.bf16 %v856_v53, %v855_v52  ;;  %v1041_v53 = vld [vmem:[#allocation5 + $0x570] sm:$0xff] }
 0x40d   :  { %1883 = vmatprep.subr.bf16.mxu0 %v2076_v0 }
 0x410   :  { %1885 = vmatpush3.bf16.msra.mxu0 %v1884_v57  ;;  %v1938_v57 = vpack.c.bf16 %v858_v56, %v857_v55  ;;  %v1148_v56 = vld [vmem:[#allocation5 + $0x58b] ss:$0 sm:$0xff] }
 0x411   :  { %1886 = vmatprep.subr.bf16.mxu0 %v2076_v0 }
 0x414   :  { %1888 = vmatpush3.bf16.msra.mxu0 %v1887_v60  ;;  %v1914_v60 = vpack.c.bf16 %v767_v59, %v766_v58 }
 0x415   :  { %1889 = vmatprep.subr.bf16.mxu0 %v2076_v0 }
 0x418   :  { %1891 = vmatpush3.bf16.msra.mxu0 %v1890_v6 }
 0x419   :  { %1916 = vmatprep.subr.bf16.mxu0 %v2076_v0 }
 0x4ce   :  { %v563_v62 = vpop.f32.mrb[4].mxu0 }
 0x4cf   :  { %v564_v63 = vadd.f32 %v1145_v61, %v563_v62  ;;  %v1513_v2 = vpop.f32.mrb[5].mxu0  ;;  %v1147_v61 = vld [vmem:[#allocation5 + $0x58a] ss:$0 sm:$0xff]  ;;  %v935_v62 = vld [vmem:[#allocation5 + $0x480] sm:$0xff] }
 0x4d1   :  { %v567_v3 = vmax.f32 %v564_v63, 0.0  ;;  %v936_v63 = vld [vmem:[#allocation5 + $0x488] sm:$0xff] }
 0x4d2   :  { %v1941_v5 = vpack.c.bf16 %v936_v63, %v935_v62 }
 0x4d3   :  { %1547 = vmatmul.mubr.f32.vlgmr.msra.gmra.mrb[4].mxu1 %v567_v3 }
 0x4d4   :  { %1616 = vmatprep.mubr.msk.f32.mxu1 %vm2077_vm0, %v2078_v1  ;;  %1894 = vmatpush3.bf16.msra.mxu1 %v1893_v10  ;;  %v940_v10 = vld [vmem:[#allocation5 + $0x4a8] sm:$0xff] }
 0x4d5   :  { %1895 = vmatprep.subr.bf16.mxu1 %v2076_v0  ;;  %v1947_v11 = vpack.c.bf16 %v940_v10, %v939_v9 }
 0x4d8   :  { %1897 = vmatpush3.bf16.msra.mxu1 %v1896_v12  ;;  %v941_v12 = vld [vmem:[#allocation5 + $0x4b0] sm:$0xff] }
 0x4d9   :  { %1898 = vmatprep.subr.bf16.mxu1 %v2076_v0  ;;  %v1950_v15 = vpack.c.bf16 %v942_v13, %v941_v12 }
 0x4dc   :  { %1900 = vmatpush3.bf16.msra.mxu1 %v1899_v16  ;;  %v943_v16 = vld [vmem:[#allocation5 + $0x4c0] sm:$0xff] }
 0x4dd   :  { %1901 = vmatprep.subr.bf16.mxu1 %v2076_v0  ;;  %v1953_v18 = vpack.c.bf16 %v944_v17, %v943_v16 }
 0x4e0   :  { %1903 = vmatpush3.bf16.msra.mxu1 %v1902_v19  ;;  %v946_v19 = vld [vmem:[#allocation5 + $0x4d8] sm:$0xff] }
 0x4e1   :  { %1904 = vmatprep.subr.bf16.mxu1 %v2076_v0 }
 0x4e4   :  { %1906 = vmatpush3.bf16.msra.mxu1 %v1905_v22  ;;  %v948_v22 = vld [vmem:[#allocation5 + $0x4e8] sm:$0xff] }
 0x4e5   :  { %1907 = vmatprep.subr.bf16.mxu1 %v2076_v0  ;;  %v1959_v23 = vpack.c.bf16 %v948_v22, %v947_v21 }
 0x4e8   :  { %1909 = vmatpush3.bf16.msra.mxu1 %v1908_v25  ;;  %v950_v25 = vld [vmem:[#allocation5 + $0x4f8] sm:$0xff] }
 0x4e9   :  { %1910 = vmatprep.subr.bf16.mxu1 %v2076_v0  ;;  %v1962_v27 = vpack.c.bf16 %v950_v25, %v949_v24 }
 0x4ec   :  { %1912 = vmatpush3.bf16.msra.mxu1 %v1911_v28 }
 0x4ed   :  { %1913 = vmatprep.subr.bf16.mxu1 %v2076_v0 }
 0x4f0   :  { %1915 = vmatpush3.bf16.msra.mxu1 %v1914_v60  ;;  %v1150_v60 = vld [vmem:[#allocation5 + $0x58d] ss:$0 sm:$0xff] }
 0x4f1   :  { %1940 = vmatprep.subr.bf16.mxu1 %v2076_v0 }
 0x5a6   :  { %v655_v32 = vpop.f32.mrb[4].mxu1 }
 0x5a7   :  { %v656_v33 = vadd.f32 %v1146_v29, %v655_v32  ;;  %v1548_v34 = vpop.f32.mrb[5].mxu1  ;;  %v1027_v32 = vld [vmem:[#allocation5 + $0x500] sm:$0xff] }
 0x5a8   :  { %v1029_v34 = vld [vmem:[#allocation5 + $0x510] sm:$0xff] }
 0x5a9   :  { %v659_v36 = vmax.f32 %v656_v33, 0.0  ;;  %v1028_v33 = vld [vmem:[#allocation5 + $0x508] sm:$0xff] }
 0x5ab   :  { %1582 = vmatmul.mubr.f32.vlgmr.msra.gmra.mrb[6].mxu0 %v659_v36  ;;  %v1030_v36 = vld [vmem:[#allocation5 + $0x518] sm:$0xff] }
 0x5ac   :  { %1918 = vmatpush3.bf16.msra.mxu0 %v1917_v35  ;;  %1651 = vmatprep.mubr.msk.f32.mxu0 %vm2077_vm0, %v2078_v1  ;;  %v1965_v35 = vpack.c.bf16 %v1028_v33, %v1027_v32  ;;  %v1968_v38 = vpack.c.bf16 %v1030_v36, %v1029_v34 }
 0x5ad   :  { %1919 = vmatprep.subr.bf16.mxu0 %v2076_v0 }
 0x5b0   :  { %1921 = vmatpush3.bf16.msra.mxu0 %v1920_v40  ;;  %v1032_v40 = vld [vmem:[#allocation5 + $0x528] sm:$0xff] }
 0x5b1   :  { %1922 = vmatprep.subr.bf16.mxu0 %v2076_v0  ;;  %v1971_v41 = vpack.c.bf16 %v1032_v40, %v1031_v39 }
 0x5b4   :  { %1924 = vmatpush3.bf16.msra.mxu0 %v1923_v43  ;;  %v1034_v43 = vld [vmem:[#allocation5 + $0x538] sm:$0xff] }
 0x5b5   :  { %1925 = vmatprep.subr.bf16.mxu0 %v2076_v0  ;;  %v1974_v44 = vpack.c.bf16 %v1034_v43, %v1033_v42 }
 0x5b8   :  { %1927 = vmatpush3.bf16.msra.mxu0 %v1926_v46  ;;  %v1036_v46 = vld [vmem:[#allocation5 + $0x548] sm:$0xff] }
 0x5b9   :  { %1928 = vmatprep.subr.bf16.mxu0 %v2076_v0  ;;  %v1977_v47 = vpack.c.bf16 %v1036_v46, %v1035_v45 }
 0x5bc   :  { %1930 = vmatpush3.bf16.msra.mxu0 %v1929_v49  ;;  %v1038_v49 = vld [vmem:[#allocation5 + $0x558] sm:$0xff] }
 0x5bd   :  { %1931 = vmatprep.subr.bf16.mxu0 %v2076_v0  ;;  %v1980_v50 = vpack.c.bf16 %v1038_v49, %v1037_v48 }
 0x5c0   :  { %1933 = vmatpush3.bf16.msra.mxu0 %v1932_v51  ;;  %v1040_v51 = vld [vmem:[#allocation5 + $0x568] sm:$0xff] }
 0x5c1   :  { %1934 = vmatprep.subr.bf16.mxu0 %v2076_v0  ;;  %v1983_v52 = vpack.c.bf16 %v1040_v51, %v1039_v14 }
 0x5c4   :  { %1936 = vmatpush3.bf16.msra.mxu0 %v1935_v54  ;;  %v1042_v54 = vld [vmem:[#allocation5 + $0x578] sm:$0xff] }
 0x5c5   :  { %1937 = vmatprep.subr.bf16.mxu0 %v2076_v0  ;;  %v1986_v55 = vpack.c.bf16 %v1042_v54, %v1041_v53 }
 0x5c8   :  { %1939 = vmatpush3.bf16.msra.mxu0 %v1938_v57 }
 0x5c9   :  { %1964 = vmatprep.subr.bf16.mxu0 %v2076_v0 }
 0x5cb   :  { %1652 = vmatmul.mubr.f32.vlgmr.msra.gmra.mrb[8].mxu0 %v2196_v37  ;;  %v1944_v37 = vpack.c.bf16 %v938_v8, %v937_v7 }
 0x5cc   :  { %1721 = vmatprep.mubr.msk.f32.mxu0 %vm2077_vm0, %v2078_v1  ;;  %1966 = vmatpush3.bf16.msra.mxu0 %v1965_v35 }
 0x5cd   :  { %1967 = vmatprep.subr.bf16.mxu0 %v2076_v0 }
 0x5d0   :  { %1969 = vmatpush3.bf16.msra.mxu0 %v1968_v38 }
 0x5d1   :  { %1970 = vmatprep.subr.bf16.mxu0 %v2076_v0 }
 0x5d4   :  { %1972 = vmatpush3.bf16.msra.mxu0 %v1971_v41 }
 0x5d5   :  { %1973 = vmatprep.subr.bf16.mxu0 %v2076_v0 }
 0x5d8   :  { %1975 = vmatpush3.bf16.msra.mxu0 %v1974_v44 }
 0x5d9   :  { %1976 = vmatprep.subr.bf16.mxu0 %v2076_v0 }
 0x5dc   :  { %1978 = vmatpush3.bf16.msra.mxu0 %v1977_v47 }
 0x5dd   :  { %1979 = vmatprep.subr.bf16.mxu0 %v2076_v0 }
 0x5e0   :  { %1981 = vmatpush3.bf16.msra.mxu0 %v1980_v50 }
 0x5e1   :  { %1982 = vmatprep.subr.bf16.mxu0 %v2076_v0 }
 0x5e4   :  { %1984 = vmatpush3.bf16.msra.mxu0 %v1983_v52 }
 0x5e5   :  { %1985 = vmatprep.subr.bf16.mxu0 %v2076_v0 }
 0x5e8   :  { %1987 = vmatpush3.bf16.msra.mxu0 %v1986_v55 }
 0x67e   :  { %v747_v2 = vpop.f32.mrb[6].mxu0 }
 0x67f   :  { %v748_v3 = vadd.f32 %v1147_v61, %v747_v2  ;;  %v1583_v4 = vpop.f32.mrb[7].mxu0 }
 0x681   :  { %v751_v6 = vmax.f32 %v748_v3, 0.0  ;;  %v1151_v3 = vld [vmem:[#allocation5 + $0x58e] ss:$0 sm:$0xff] }
 0x683   :  { %1617 = vmatmul.mubr.f32.vlgmr.msra.gmra.mrb[6].mxu1 %v751_v6 }
 0x684   :  { %1942 = vmatpush3.bf16.msra.mxu1 %v1941_v5  ;;  %1686 = vmatprep.mubr.msk.f32.mxu1 %vm2077_vm0, %v2078_v1  ;;  %v945_v1 = vld [vmem:[#allocation5 + $0x4d0] sm:$0xff] }
 0x685   :  { %1943 = vmatprep.subr.bf16.mxu1 %v2076_v0  ;;  %v1956_v20 = vpack.c.bf16 %v946_v19, %v945_v1 }
 0x688   :  { %1945 = vmatpush3.bf16.msra.mxu1 %v1944_v37 }
 0x689   :  { %1946 = vmatprep.subr.bf16.mxu1 %v2076_v0 }
 0x68c   :  { %1948 = vmatpush3.bf16.msra.mxu1 %v1947_v11 }
 0x68d   :  { %1949 = vmatprep.subr.bf16.mxu1 %v2076_v0 }
 0x690   :  { %1951 = vmatpush3.bf16.msra.mxu1 %v1950_v15 }
 0x691   :  { %1952 = vmatprep.subr.bf16.mxu1 %v2076_v0 }
 0x694   :  { %1954 = vmatpush3.bf16.msra.mxu1 %v1953_v18 }
 0x695   :  { %1955 = vmatprep.subr.bf16.mxu1 %v2076_v0 }
 0x698   :  { %1957 = vmatpush3.bf16.msra.mxu1 %v1956_v20 }
 0x699   :  { %1958 = vmatprep.subr.bf16.mxu1 %v2076_v0 }
 0x69c   :  { %1960 = vmatpush3.bf16.msra.mxu1 %v1959_v23 }
 0x69d   :  { %1961 = vmatprep.subr.bf16.mxu1 %v2076_v0 }
 0x69e   :  { %v930_v28 = vpop.f32.mrb[8].mxu0 }
 0x69f   :  { %v931_v29 = vadd.f32 %v1149_v26, %v930_v28  ;;  %v1653_v30 = vpop.f32.mrb[9].mxu0 }
 0x6a0   :  { %1963 = vmatpush3.bf16.msra.mxu1 %v1962_v27 }
 0x6a1   :  { %v934_v31 = vmax.f32 %v931_v29, 0.0 }
 0x6a3   :  { %1687 = vmatmul.mubr.f32.vlgmr.msra.gmra.mrb[8].mxu1 %v934_v31 }
 0x756   :  { %v839_v57 = vpop.f32.mrb[6].mxu1 }
 0x757   :  { %v840_v58 = vadd.f32 %v1148_v56, %v839_v57  ;;  %v1618_v59 = vpop.f32.mrb[7].mxu1 }
 0x759   :  { %1120 = vst [vmem:[#allocation7 + $0x8] sm:$0xff] %v840_v58 }
 0x776   :  { %v1022_v61 = vpop.f32.mrb[8].mxu1 }
 0x777   :  { %v1023_v62 = vadd.f32 %v1150_v60, %v1022_v61  ;;  %v1688_v63 = vpop.f32.mrb[9].mxu1 }
 0x779   :  { %v1026_v2 = vmax.f32 %v1023_v62, 0.0 }
 0x77b   :  { %1722 = vmatmul.mubr.f32.vlgmr.msra.gmra.mrb[10].mxu0 %v1026_v2 }
 0x84e   :  { %v1114_v4 = vpop.f32.mrb[10].mxu0 }
 0x84f   :  { %v1115_v0 = vadd.f32 %v1151_v3, %v1114_v4  ;;  %v1723_v5 = vpop.f32.mrb[11].mxu0 }
 0x851   :  { %1122 = vst [vmem:[#allocation7 + $0x10] sm:$0xff] %v1115_v0 }
 0x852   :  { %2055 = shalt.err (!%p2052_p6)
}
 0x853   :  { %s2056_s10 = scalar_lea.hbm %s2267_s2, 384 }
 0x854   :  { %p2057_p7 = scmp.ne.s32.totalorder %s2267_s2, %s2056_s10  ;;  %p2060_p8 = scmp.lt.u32.totalorder %s2056_s10, %s2267_s2 }
 0x856   :  { %p2062_p9 = pnand %p2060_p8, %p2057_p7 }
 0x858   :  { %2065 = shalt.err (!%p2062_p9)
}
 0x859   :  { %1134 = dma.vmem_to_hbm [thread:$0]  %s1129_s6, 384, %s2267_s2, [#allocation4], %s2074_s0, %s2074_s0, %s2075_s3  }
 0x85a   :  { %2070 = dma.done.wait [#allocation4], 384  }
 0x85b   :  { %2071 = vsyncadd [#allocation4], 4294966912 }
 0x85c   :  { %1138 = vsyncpa [#allocation3], 1 }
 0x85d   :  { %1139 = vsyncpa [#allocation6], 1 }
 0x85e   :  { %1140 = vsyncpa [#allocation4], 1 }

</bundles_post_ra>
